<compile_context>
chip_gen: v7x
topology: tpu7x:2x2x1
jax: 0.10.0
libtpu: 0.0.40
codegen_flags: <defaults>
</compile_context>

<pallas_src>
import math
import functools

import jax
import jax.numpy as jnp
from jax import lax
from jax.experimental import pallas as pl
from jax.experimental.pallas import tpu as pltpu


def _mhsa_kernel(x_ref, am_ref, wqkv_ref, bqkv_ref, wout_ref, bout_ref, o_ref,
                 ctx_ref, *, n_heads, scale):
    """Fused causal multi-head self-attention for a block of Bb batch elements.

    x_ref:    (Bb, T, C)   input activations (native dtype)
    am_ref:   (Bb, 1, T)   key-padding mask (1.0 = keep, 0.0 = masked)
    wqkv_ref: (C, 3C)      fused QKV projection weight
    bqkv_ref: (1, 3C)
    wout_ref: (C, C)       output projection weight
    bout_ref: (1, C)
    o_ref:    (Bb, T, C)
    ctx_ref:  (Bb, T, C)   f32 VMEM scratch for per-head context (replaces concat)
    """
    Bb, T, C = x_ref.shape
    hd = C // n_heads
    cdt = x_ref.dtype                      # bf16 stays bf16 on the MXU

    # ---- Fused QKV projection over the whole batch block (deep-K matmul).
    x2 = x_ref[...].reshape(Bb * T, C)
    qkv = jnp.dot(x2, wqkv_ref[...], preferred_element_type=jnp.float32)
    qkv = qkv + bqkv_ref[...].astype(jnp.float32)                  # (Bb*T, 3C) f32

    # Fold the 1/sqrt(hd) scale into Q once (Bb*T*C muls, not T*T per head).
    q = (qkv[:, 0 * C:1 * C] * scale).astype(cdt).reshape(Bb, T, C)
    k = qkv[:, 1 * C:2 * C].astype(cdt).reshape(Bb, T, C)
    v = qkv[:, 2 * C:3 * C].astype(cdt).reshape(Bb, T, C)

    # ---- Combined additive mask (causal + key padding), computed once per step.
    # Causal part stays -inf, padding part stays additive finfo.min -- this is
    # exactly the PyTorch masked_fill(-inf) + additive-mask composition.
    am = am_ref[...].astype(jnp.float32)                            # (Bb, 1, T)
    pad_add = (1.0 - am) * jnp.finfo(jnp.float32).min               # (Bb, 1, T)
    rows = lax.broadcasted_iota(jnp.int32, (T, T), 0)
    cols = lax.broadcasted_iota(jnp.int32, (T, T), 1)
    causal_add = jnp.where(cols <= rows, 0.0, -jnp.inf).astype(jnp.float32)
    mask_add = causal_add[None, :, :] + pad_add                     # (Bb, T, T)

    # ---- Per-head attention, batched over the Bb batch elements.
    for h in range(n_heads):                                        # static unroll
        sl = slice(h * hd, (h + 1) * hd)
        qh, kh, vh = q[:, :, sl], k[:, :, sl], v[:, :, sl]          # (Bb, T, hd)
        s = jnp.einsum('bqd,bkd->bqk', qh, kh,
                       preferred_element_type=jnp.float32)          # (Bb, T, T) f32
        s = s + mask_add
        m = jnp.max(s, axis=-1, keepdims=True)
        e = jnp.exp(s - m)
        # EUP reciprocal (its own VLIW slot) instead of a VPU-serialized divide.
        p = e * pl.reciprocal(jnp.sum(e, axis=-1, keepdims=True), approx=True)
        # TODO(synk): attention_dropout omitted (eval-mode identity).
        ctx_ref[:, :, sl] = jnp.einsum('bqk,bkd->bqd', p.astype(cdt), vh,
                                       preferred_element_type=jnp.float32)

    # ---- Output projection over the whole batch block (single deep-K matmul).
    ctx = ctx_ref[...].reshape(Bb * T, C).astype(cdt)
    y = jnp.dot(ctx, wout_ref[...], preferred_element_type=jnp.float32)
    y = y + bout_ref[...].astype(jnp.float32)
    # TODO(synk): output_dropout omitted (eval-mode identity).
    o_ref[...] = y.reshape(Bb, T, C).astype(o_ref.dtype)


def _pick_batch_block(B, T, C, itemsize):
    """Largest batch block (divisor of B, <=16) whose working set fits ~24 MiB."""
    per_elem = (T * C * itemsize            # x tile
                + 4 * T * 3 * C             # qkv (f32)
                + 3 * 4 * T * C             # q, k, v
                + 3 * 4 * T * T             # scores / exp / mask
                + 2 * 4 * T * C)            # ctx scratch + y
    budget = 24 * 1024 * 1024
    bb = int(max(1, min(B, budget // max(per_elem, 1), 16)))
    while B % bb:                            # full blocks only (no ragged tail)
        bb -= 1
    return bb


@functools.partial(jax.jit, static_argnames=("n_heads", "batch_block"))
def masked_mhsa(x, wqkv, bqkv, wout, bout, attention_mask=None, *,
                n_heads=4, batch_block=None):
    """x: [B, T, C] -> [B, T, C].  wqkv: [C, 3C], bqkv: [3C], wout: [C, C], bout: [C]."""
    B, T, C = x.shape
    assert C % n_heads == 0
    scale = 1.0 / math.sqrt(C // n_heads)

    if attention_mask is None:
        attention_mask = jnp.ones((B, T), x.dtype)
    am = attention_mask.astype(x.dtype).reshape(B, 1, T)

    Bb = batch_block if batch_block is not None else _pick_batch_block(
        B, T, C, x.dtype.itemsize)
    assert B % Bb == 0, "batch_block must divide the batch size"

    bqkv_2d = bqkv.reshape(1, 3 * C)
    bout_2d = bout.reshape(1, C)

    kernel = functools.partial(_mhsa_kernel, n_heads=n_heads, scale=scale)

    return pl.pallas_call(
        kernel,
        out_shape=jax.ShapeDtypeStruct((B, T, C), x.dtype),
        grid_spec=pltpu.PrefetchScalarGridSpec(
            num_scalar_prefetch=0,
            grid=(B // Bb,),
            in_specs=[
                pl.BlockSpec((Bb, T, C), lambda b: (b, 0, 0)),     # x (batch block)
                pl.BlockSpec((Bb, 1, T), lambda b: (b, 0, 0)),     # key-padding mask
                pl.BlockSpec((C, 3 * C), lambda b: (0, 0)),        # Wqkv (resident)
                pl.BlockSpec((1, 3 * C), lambda b: (0, 0)),        # bqkv
                pl.BlockSpec((C, C), lambda b: (0, 0)),            # Wout (resident)
                pl.BlockSpec((1, C), lambda b: (0, 0)),            # bout
            ],
            out_specs=pl.BlockSpec((Bb, T, C), lambda b: (b, 0, 0)),
            scratch_shapes=[pltpu.VMEM((Bb, T, C), jnp.float32)],  # ctx scratch
        ),
        compiler_params=pltpu.CompilerParams(
            dimension_semantics=("parallel",),
            # Above the 16/32 MiB scoped defaults (v5e / v6e,v7x), below v7x's
            # 64 MiB physical VMEM.
            vmem_limit_bytes=48 * 1024 * 1024,
        ),
    )(x, am, wqkv, bqkv_2d, wout, bout_2d)


def _init_linear(key, fan_in, fan_out, dtype=jnp.float32):
    """Mimics torch nn.Linear default init: U(-1/sqrt(fan_in), 1/sqrt(fan_in))."""
    kw, kb = jax.random.split(key)
    bound = 1.0 / math.sqrt(fan_in)
    w = jax.random.uniform(kw, (fan_in, fan_out), dtype, minval=-bound, maxval=bound)
    b = jax.random.uniform(kb, (fan_out,), dtype, minval=-bound, maxval=bound)
    return w, b


def _reference(x, wqkv, bqkv, wout, bout, attention_mask, n_heads):
    """Pure-JAX mirror of the PyTorch MaskedMultiheadSelfAttention.forward (eval)."""
    B, T, C = x.shape
    hd = C // n_heads
    hp = lax.Precision.HIGHEST
    qkv = jnp.dot(x, wqkv, precision=hp) + bqkv
    q, k, v = jnp.split(qkv, 3, axis=-1)

    def split_heads(t):
        return t.reshape(B, T, n_heads, hd).transpose(0, 2, 1, 3)

    q, k, v = split_heads(q), split_heads(k), split_heads(v)
    att = jnp.einsum('bhqd,bhkd->bhqk', q, k, precision=hp) / math.sqrt(hd)
    causal = jnp.tril(jnp.ones((T, T), bool))
    att = jnp.where(causal[None, None], att, -jnp.inf)
    am = attention_mask[:, None, None, :]
    att = att + (1.0 - am) * jnp.finfo(att.dtype).min
    att = jax.nn.softmax(att, axis=-1)
    out = jnp.einsum('bhqk,bhkd->bhqd', att, v, precision=hp)
    out = out.transpose(0, 2, 1, 3).reshape(B, T, C)
    return jnp.dot(out, wout, precision=hp) + bout


if __name__ == "__main__":
    # Small shapes consistent with the module: batch=4, seq=8, embedding_dim=32, 4 heads.
    B, T, C, n_heads = 4, 8, 32, 4

    key = jax.random.PRNGKey(0)
    kx, kqkv, kout = jax.random.split(key, 3)

    x = jax.random.normal(kx, (B, T, C), jnp.float32)
    wqkv, bqkv = _init_linear(kqkv, C, 3 * C)    # qkv_projection: C -> 3C
    wout, bout = _init_linear(kout, C, C)        # output_projection: C -> C

    # Key-padding mask exercising the attention_mask path.
    attention_mask = jnp.ones((B, T), jnp.float32)
    attention_mask = attention_mask.at[1, T - 1].set(0.0)
    attention_mask = attention_mask.at[3, T - 2:].set(0.0)

    # batch_block=2 -> grid=(2,): exercises multi-element blocks and >1 grid step.
    y = masked_mhsa(x, wqkv, bqkv, wout, bout, attention_mask,
                    n_heads=n_heads, batch_block=2)
    y = jax.block_until_ready(y)

    y_ref = _reference(x, wqkv, bqkv, wout, bout, attention_mask, n_heads)
    assert y.shape == (B, T, C)
    # Tolerance relaxed vs exact-divide version because the softmax denominator
    # uses the approximate EUP reciprocal (use approx=False for tighter accuracy).
    assert jnp.allclose(y, y_ref, atol=2e-3, rtol=2e-3), \
        float(jnp.max(jnp.abs(y - y_ref)))

    print("KERNEL_OK")
</pallas_src>

<mosaic_0001>
module attributes {stable_mosaic.version = 11 : i64} {
  func.func @_mhsa_kernel(%arg0: i32, %arg1: memref<2x8x32xf32, #tpu.memory_space<vmem>>, %arg2: memref<2x1x8xf32, #tpu.memory_space<vmem>>, %arg3: memref<32x96xf32, #tpu.memory_space<vmem>>, %arg4: memref<1x96xf32, #tpu.memory_space<vmem>>, %arg5: memref<32x32xf32, #tpu.memory_space<vmem>>, %arg6: memref<1x32xf32, #tpu.memory_space<vmem>>, %arg7: memref<2x8x32xf32, #tpu.memory_space<vmem>>, %arg8: memref<2x8x32xf32, #tpu.memory_space<vmem>>) attributes {dimension_semantics = [#tpu.dimension_semantics<parallel>], iteration_bounds = array<i64: 2>, scalar_prefetch = 0 : i64, scratch_operands = 1 : i64, tpu.core_type = #tpu.core_type<tc>, window_params = [{transform_indices = @transform_0, window_bounds = array<i64: 2, 8, 32>}, {transform_indices = @transform_1, window_bounds = array<i64: 2, 1, 8>}, {pipeline_mode = #tpu.pipeline_mode<synchronous>, transform_indices = @transform_2, window_bounds = array<i64: 32, 96>}, {pipeline_mode = #tpu.pipeline_mode<synchronous>, transform_indices = @transform_3, window_bounds = array<i64: 1, 96>}, {pipeline_mode = #tpu.pipeline_mode<synchronous>, transform_indices = @transform_4, window_bounds = array<i64: 32, 32>}, {pipeline_mode = #tpu.pipeline_mode<synchronous>, transform_indices = @transform_5, window_bounds = array<i64: 1, 32>}, {transform_indices = @transform_6, window_bounds = array<i64: 2, 8, 32>}]} {
    %c0 = arith.constant 0 : index
    %c0_0 = arith.constant 0 : index
    %c0_1 = arith.constant 0 : index
    %0 = vector.load %arg1[%c0, %c0_0, %c0_1] : memref<2x8x32xf32, #tpu.memory_space<vmem>>, vector<2x8x32xf32>
    %1 = vector.shape_cast %0 : vector<2x8x32xf32> to vector<16x32xf32>
    %c0_2 = arith.constant 0 : index
    %c0_3 = arith.constant 0 : index
    %2 = vector.load %arg3[%c0_2, %c0_3] : memref<32x96xf32, #tpu.memory_space<vmem>>, vector<32x96xf32>
    %cst = arith.constant dense<0.000000e+00> : vector<16x96xf32>
    %3 = tpu.matmul %1, %2, %cst {dimension_numbers = #tpu.dot_dimension_numbers<[1], [0], [0], [1], [0, 0, 1, 1], [], []>} : vector<16x32xf32>, vector<32x96xf32>, vector<16x96xf32> -> vector<16x96xf32>
    %c0_4 = arith.constant 0 : index
    %c0_5 = arith.constant 0 : index
    %4 = vector.load %arg4[%c0_4, %c0_5] : memref<1x96xf32, #tpu.memory_space<vmem>>, vector<1x96xf32>
    %5 = vector.broadcast %4 : vector<1x96xf32> to vector<16x96xf32>
    %6 = arith.addf %3, %5 : vector<16x96xf32>
    %7 = vector.extract_strided_slice %6 {offsets = [0, 0], sizes = [16, 32], strides = [1, 1]} : vector<16x96xf32> to vector<16x32xf32>
    %cst_6 = arith.constant 0.353553385 : f32
    %8 = vector.broadcast %cst_6 : f32 to vector<16x32xf32>
    %9 = arith.mulf %7, %8 : vector<16x32xf32>
    %10 = vector.shape_cast %9 : vector<16x32xf32> to vector<2x8x32xf32>
    %11 = vector.extract_strided_slice %6 {offsets = [0, 32], sizes = [16, 32], strides = [1, 1]} : vector<16x96xf32> to vector<16x32xf32>
    %12 = vector.shape_cast %11 : vector<16x32xf32> to vector<2x8x32xf32>
    %13 = vector.extract_strided_slice %6 {offsets = [0, 64], sizes = [16, 32], strides = [1, 1]} : vector<16x96xf32> to vector<16x32xf32>
    %14 = vector.shape_cast %13 : vector<16x32xf32> to vector<2x8x32xf32>
    %c0_7 = arith.constant 0 : index
    %c0_8 = arith.constant 0 : index
    %c0_9 = arith.constant 0 : index
    %15 = vector.load %arg2[%c0_7, %c0_8, %c0_9] : memref<2x1x8xf32, #tpu.memory_space<vmem>>, vector<2x1x8xf32>
    %cst_10 = arith.constant 1.000000e+00 : f32
    %16 = vector.broadcast %cst_10 : f32 to vector<2x1x8xf32>
    %17 = arith.subf %16, %15 : vector<2x1x8xf32>
    %cst_11 = arith.constant -3.40282347E+38 : f32
    %18 = vector.broadcast %cst_11 : f32 to vector<2x1x8xf32>
    %19 = arith.mulf %17, %18 : vector<2x1x8xf32>
    %20 = tpu.iota {dimensions = array<i32: 0>} : vector<8x8xi32>
    %21 = tpu.iota {dimensions = array<i32: 1>} : vector<8x8xi32>
    %22 = arith.cmpi sle, %21, %20 : vector<8x8xi32>
    %cst_12 = arith.constant 0.000000e+00 : f32
    %cst_13 = arith.constant 0xFF800000 : f32
    %23 = vector.broadcast %cst_12 : f32 to vector<8x8xf32>
    %24 = vector.broadcast %cst_13 : f32 to vector<8x8xf32>
    %25 = arith.select %22, %23, %24 : vector<8x8xi1>, vector<8x8xf32>
    %26 = vector.shape_cast %25 : vector<8x8xf32> to vector<1x8x8xf32>
    %27 = vector.broadcast %26 : vector<1x8x8xf32> to vector<2x8x8xf32>
    %28 = vector.broadcast %19 : vector<2x1x8xf32> to vector<2x8x8xf32>
    %29 = arith.addf %27, %28 : vector<2x8x8xf32>
    %30 = vector.extract_strided_slice %10 {offsets = [0, 0, 0], sizes = [2, 8, 8], strides = [1, 1, 1]} : vector<2x8x32xf32> to vector<2x8x8xf32>
    %31 = vector.extract_strided_slice %12 {offsets = [0, 0, 0], sizes = [2, 8, 8], strides = [1, 1, 1]} : vector<2x8x32xf32> to vector<2x8x8xf32>
    %32 = vector.extract_strided_slice %14 {offsets = [0, 0, 0], sizes = [2, 8, 8], strides = [1, 1, 1]} : vector<2x8x32xf32> to vector<2x8x8xf32>
    "tpu.trace_start"() <{level = 10 : i32, message = "bqd,bkd->bqk"}> : () -> ()
    %cst_14 = arith.constant dense<0.000000e+00> : vector<2x8x8xf32>
    %33 = tpu.matmul %30, %31, %cst_14 {dimension_numbers = #tpu.dot_dimension_numbers<[2], [2], [1], [1], [0, 0, 0, 1, 1, 1], [0], [0]>} : vector<2x8x8xf32>, vector<2x8x8xf32>, vector<2x8x8xf32> -> vector<2x8x8xf32>
    "tpu.trace_stop"() : () -> ()
    %34 = arith.addf %33, %29 : vector<2x8x8xf32>
    %cst_15 = arith.constant dense<0xFF800000> : vector<2x8xf32>
    %35 = vector.multi_reduction <maximumf>, %34, %cst_15 [2] : vector<2x8x8xf32> to vector<2x8xf32>
    %36 = vector.shape_cast %35 : vector<2x8xf32> to vector<2x8x1xf32>
    %37 = vector.broadcast %36 : vector<2x8x1xf32> to vector<2x8x8xf32>
    %38 = arith.subf %34, %37 : vector<2x8x8xf32>
    %39 = math.exp %38 : vector<2x8x8xf32>
    %cst_16 = arith.constant dense<0.000000e+00> : vector<2x8xf32>
    %40 = vector.multi_reduction <add>, %39, %cst_16 [2] : vector<2x8x8xf32> to vector<2x8xf32>
    %41 = vector.shape_cast %40 : vector<2x8xf32> to vector<2x8x1xf32>
    %42 = tpu.reciprocal %41 {approx = true} : vector<2x8x1xf32> -> vector<2x8x1xf32>
    %43 = vector.broadcast %42 : vector<2x8x1xf32> to vector<2x8x8xf32>
    %44 = arith.mulf %39, %43 : vector<2x8x8xf32>
    "tpu.trace_start"() <{level = 10 : i32, message = "bqk,bkd->bqd"}> : () -> ()
    %cst_17 = arith.constant dense<0.000000e+00> : vector<2x8x8xf32>
    %45 = tpu.matmul %44, %32, %cst_17 {dimension_numbers = #tpu.dot_dimension_numbers<[2], [1], [1], [2], [0, 0, 0, 1, 1, 2], [0], [0]>} : vector<2x8x8xf32>, vector<2x8x8xf32>, vector<2x8x8xf32> -> vector<2x8x8xf32>
    "tpu.trace_stop"() : () -> ()
    %c0_18 = arith.constant 0 : index
    %c0_19 = arith.constant 0 : index
    %c0_20 = arith.constant 0 : index
    %46 = vector.load %arg8[%c0_18, %c0_19, %c0_20] : memref<2x8x32xf32, #tpu.memory_space<vmem>>, vector<2x8x8xf32>
    tpu.vector_store %arg8[%c0_18, %c0_19, %c0_20], %45 {strides = array<i32>} : memref<2x8x32xf32, #tpu.memory_space<vmem>>, vector<2x8x8xf32>,
    %47 = vector.extract_strided_slice %10 {offsets = [0, 0, 8], sizes = [2, 8, 8], strides = [1, 1, 1]} : vector<2x8x32xf32> to vector<2x8x8xf32>
    %48 = vector.extract_strided_slice %12 {offsets = [0, 0, 8], sizes = [2, 8, 8], strides = [1, 1, 1]} : vector<2x8x32xf32> to vector<2x8x8xf32>
    %49 = vector.extract_strided_slice %14 {offsets = [0, 0, 8], sizes = [2, 8, 8], strides = [1, 1, 1]} : vector<2x8x32xf32> to vector<2x8x8xf32>
    "tpu.trace_start"() <{level = 10 : i32, message = "bqd,bkd->bqk"}> : () -> ()
    %cst_21 = arith.constant dense<0.000000e+00> : vector<2x8x8xf32>
    %50 = tpu.matmul %47, %48, %cst_21 {dimension_numbers = #tpu.dot_dimension_numbers<[2], [2], [1], [1], [0, 0, 0, 1, 1, 1], [0], [0]>} : vector<2x8x8xf32>, vector<2x8x8xf32>, vector<2x8x8xf32> -> vector<2x8x8xf32>
    "tpu.trace_stop"() : () -> ()
    %51 = arith.addf %50, %29 : vector<2x8x8xf32>
    %cst_22 = arith.constant dense<0xFF800000> : vector<2x8xf32>
    %52 = vector.multi_reduction <maximumf>, %51, %cst_22 [2] : vector<2x8x8xf32> to vector<2x8xf32>
    %53 = vector.shape_cast %52 : vector<2x8xf32> to vector<2x8x1xf32>
    %54 = vector.broadcast %53 : vector<2x8x1xf32> to vector<2x8x8xf32>
    %55 = arith.subf %51, %54 : vector<2x8x8xf32>
    %56 = math.exp %55 : vector<2x8x8xf32>
    %cst_23 = arith.constant dense<0.000000e+00> : vector<2x8xf32>
    %57 = vector.multi_reduction <add>, %56, %cst_23 [2] : vector<2x8x8xf32> to vector<2x8xf32>
    %58 = vector.shape_cast %57 : vector<2x8xf32> to vector<2x8x1xf32>
    %59 = tpu.reciprocal %58 {approx = true} : vector<2x8x1xf32> -> vector<2x8x1xf32>
    %60 = vector.broadcast %59 : vector<2x8x1xf32> to vector<2x8x8xf32>
    %61 = arith.mulf %56, %60 : vector<2x8x8xf32>
    "tpu.trace_start"() <{level = 10 : i32, message = "bqk,bkd->bqd"}> : () -> ()
    %cst_24 = arith.constant dense<0.000000e+00> : vector<2x8x8xf32>
    %62 = tpu.matmul %61, %49, %cst_24 {dimension_numbers = #tpu.dot_dimension_numbers<[2], [1], [1], [2], [0, 0, 0, 1, 1, 2], [0], [0]>} : vector<2x8x8xf32>, vector<2x8x8xf32>, vector<2x8x8xf32> -> vector<2x8x8xf32>
    "tpu.trace_stop"() : () -> ()
    %c0_25 = arith.constant 0 : index
    %c0_26 = arith.constant 0 : index
    %c8 = arith.constant 8 : index
    %63 = vector.load %arg8[%c0_25, %c0_26, %c8] : memref<2x8x32xf32, #tpu.memory_space<vmem>>, vector<2x8x8xf32>
    tpu.vector_store %arg8[%c0_25, %c0_26, %c8], %62 {strides = array<i32>} : memref<2x8x32xf32, #tpu.memory_space<vmem>>, vector<2x8x8xf32>,
    %64 = vector.extract_strided_slice %10 {offsets = [0, 0, 16], sizes = [2, 8, 8], strides = [1, 1, 1]} : vector<2x8x32xf32> to vector<2x8x8xf32>
    %65 = vector.extract_strided_slice %12 {offsets = [0, 0, 16], sizes = [2, 8, 8], strides = [1, 1, 1]} : vector<2x8x32xf32> to vector<2x8x8xf32>
    %66 = vector.extract_strided_slice %14 {offsets = [0, 0, 16], sizes = [2, 8, 8], strides = [1, 1, 1]} : vector<2x8x32xf32> to vector<2x8x8xf32>
    "tpu.trace_start"() <{level = 10 : i32, message = "bqd,bkd->bqk"}> : () -> ()
    %cst_27 = arith.constant dense<0.000000e+00> : vector<2x8x8xf32>
    %67 = tpu.matmul %64, %65, %cst_27 {dimension_numbers = #tpu.dot_dimension_numbers<[2], [2], [1], [1], [0, 0, 0, 1, 1, 1], [0], [0]>} : vector<2x8x8xf32>, vector<2x8x8xf32>, vector<2x8x8xf32> -> vector<2x8x8xf32>
    "tpu.trace_stop"() : () -> ()
    %68 = arith.addf %67, %29 : vector<2x8x8xf32>
    %cst_28 = arith.constant dense<0xFF800000> : vector<2x8xf32>
    %69 = vector.multi_reduction <maximumf>, %68, %cst_28 [2] : vector<2x8x8xf32> to vector<2x8xf32>
    %70 = vector.shape_cast %69 : vector<2x8xf32> to vector<2x8x1xf32>
    %71 = vector.broadcast %70 : vector<2x8x1xf32> to vector<2x8x8xf32>
    %72 = arith.subf %68, %71 : vector<2x8x8xf32>
    %73 = math.exp %72 : vector<2x8x8xf32>
    %cst_29 = arith.constant dense<0.000000e+00> : vector<2x8xf32>
    %74 = vector.multi_reduction <add>, %73, %cst_29 [2] : vector<2x8x8xf32> to vector<2x8xf32>
    %75 = vector.shape_cast %74 : vector<2x8xf32> to vector<2x8x1xf32>
    %76 = tpu.reciprocal %75 {approx = true} : vector<2x8x1xf32> -> vector<2x8x1xf32>
    %77 = vector.broadcast %76 : vector<2x8x1xf32> to vector<2x8x8xf32>
    %78 = arith.mulf %73, %77 : vector<2x8x8xf32>
    "tpu.trace_start"() <{level = 10 : i32, message = "bqk,bkd->bqd"}> : () -> ()
    %cst_30 = arith.constant dense<0.000000e+00> : vector<2x8x8xf32>
    %79 = tpu.matmul %78, %66, %cst_30 {dimension_numbers = #tpu.dot_dimension_numbers<[2], [1], [1], [2], [0, 0, 0, 1, 1, 2], [0], [0]>} : vector<2x8x8xf32>, vector<2x8x8xf32>, vector<2x8x8xf32> -> vector<2x8x8xf32>
    "tpu.trace_stop"() : () -> ()
    %c0_31 = arith.constant 0 : index
    %c0_32 = arith.constant 0 : index
    %c16 = arith.constant 16 : index
    %80 = vector.load %arg8[%c0_31, %c0_32, %c16] : memref<2x8x32xf32, #tpu.memory_space<vmem>>, vector<2x8x8xf32>
    tpu.vector_store %arg8[%c0_31, %c0_32, %c16], %79 {strides = array<i32>} : memref<2x8x32xf32, #tpu.memory_space<vmem>>, vector<2x8x8xf32>,
    %81 = vector.extract_strided_slice %10 {offsets = [0, 0, 24], sizes = [2, 8, 8], strides = [1, 1, 1]} : vector<2x8x32xf32> to vector<2x8x8xf32>
    %82 = vector.extract_strided_slice %12 {offsets = [0, 0, 24], sizes = [2, 8, 8], strides = [1, 1, 1]} : vector<2x8x32xf32> to vector<2x8x8xf32>
    %83 = vector.extract_strided_slice %14 {offsets = [0, 0, 24], sizes = [2, 8, 8], strides = [1, 1, 1]} : vector<2x8x32xf32> to vector<2x8x8xf32>
    "tpu.trace_start"() <{level = 10 : i32, message = "bqd,bkd->bqk"}> : () -> ()
    %cst_33 = arith.constant dense<0.000000e+00> : vector<2x8x8xf32>
    %84 = tpu.matmul %81, %82, %cst_33 {dimension_numbers = #tpu.dot_dimension_numbers<[2], [2], [1], [1], [0, 0, 0, 1, 1, 1], [0], [0]>} : vector<2x8x8xf32>, vector<2x8x8xf32>, vector<2x8x8xf32> -> vector<2x8x8xf32>
    "tpu.trace_stop"() : () -> ()
    %85 = arith.addf %84, %29 : vector<2x8x8xf32>
    %cst_34 = arith.constant dense<0xFF800000> : vector<2x8xf32>
    %86 = vector.multi_reduction <maximumf>, %85, %cst_34 [2] : vector<2x8x8xf32> to vector<2x8xf32>
    %87 = vector.shape_cast %86 : vector<2x8xf32> to vector<2x8x1xf32>
    %88 = vector.broadcast %87 : vector<2x8x1xf32> to vector<2x8x8xf32>
    %89 = arith.subf %85, %88 : vector<2x8x8xf32>
    %90 = math.exp %89 : vector<2x8x8xf32>
    %cst_35 = arith.constant dense<0.000000e+00> : vector<2x8xf32>
    %91 = vector.multi_reduction <add>, %90, %cst_35 [2] : vector<2x8x8xf32> to vector<2x8xf32>
    %92 = vector.shape_cast %91 : vector<2x8xf32> to vector<2x8x1xf32>
    %93 = tpu.reciprocal %92 {approx = true} : vector<2x8x1xf32> -> vector<2x8x1xf32>
    %94 = vector.broadcast %93 : vector<2x8x1xf32> to vector<2x8x8xf32>
    %95 = arith.mulf %90, %94 : vector<2x8x8xf32>
    "tpu.trace_start"() <{level = 10 : i32, message = "bqk,bkd->bqd"}> : () -> ()
    %cst_36 = arith.constant dense<0.000000e+00> : vector<2x8x8xf32>
    %96 = tpu.matmul %95, %83, %cst_36 {dimension_numbers = #tpu.dot_dimension_numbers<[2], [1], [1], [2], [0, 0, 0, 1, 1, 2], [0], [0]>} : vector<2x8x8xf32>, vector<2x8x8xf32>, vector<2x8x8xf32> -> vector<2x8x8xf32>
    "tpu.trace_stop"() : () -> ()
    %c0_37 = arith.constant 0 : index
    %c0_38 = arith.constant 0 : index
    %c24 = arith.constant 24 : index
    %97 = vector.load %arg8[%c0_37, %c0_38, %c24] : memref<2x8x32xf32, #tpu.memory_space<vmem>>, vector<2x8x8xf32>
    tpu.vector_store %arg8[%c0_37, %c0_38, %c24], %96 {strides = array<i32>} : memref<2x8x32xf32, #tpu.memory_space<vmem>>, vector<2x8x8xf32>,
    %c0_39 = arith.constant 0 : index
    %c0_40 = arith.constant 0 : index
    %c0_41 = arith.constant 0 : index
    %98 = vector.load %arg8[%c0_39, %c0_40, %c0_41] : memref<2x8x32xf32, #tpu.memory_space<vmem>>, vector<2x8x32xf32>
    %99 = vector.shape_cast %98 : vector<2x8x32xf32> to vector<16x32xf32>
    %c0_42 = arith.constant 0 : index
    %c0_43 = arith.constant 0 : index
    %100 = vector.load %arg5[%c0_42, %c0_43] : memref<32x32xf32, #tpu.memory_space<vmem>>, vector<32x32xf32>
    %cst_44 = arith.constant dense<0.000000e+00> : vector<16x32xf32>
    %101 = tpu.matmul %99, %100, %cst_44 {dimension_numbers = #tpu.dot_dimension_numbers<[1], [0], [0], [1], [0, 0, 1, 1], [], []>} : vector<16x32xf32>, vector<32x32xf32>, vector<16x32xf32> -> vector<16x32xf32>
    %c0_45 = arith.constant 0 : index
    %c0_46 = arith.constant 0 : index
    %102 = vector.load %arg6[%c0_45, %c0_46] : memref<1x32xf32, #tpu.memory_space<vmem>>, vector<1x32xf32>
    %103 = vector.broadcast %102 : vector<1x32xf32> to vector<16x32xf32>
    %104 = arith.addf %101, %103 : vector<16x32xf32>
    %105 = vector.shape_cast %104 : vector<16x32xf32> to vector<2x8x32xf32>
    %c0_47 = arith.constant 0 : index
    %c0_48 = arith.constant 0 : index
    %c0_49 = arith.constant 0 : index
    %106 = vector.load %arg7[%c0_47, %c0_48, %c0_49] : memref<2x8x32xf32, #tpu.memory_space<vmem>>, vector<2x8x32xf32>
    tpu.vector_store %arg7[%c0_47, %c0_48, %c0_49], %105 {strides = array<i32>} : memref<2x8x32xf32, #tpu.memory_space<vmem>>, vector<2x8x32xf32>,
    return
  }
  func.func @transform_0(%arg0: i32) -> (i32, i32, i32) {
    %c0_i32 = arith.constant 0 : i32
    %c0_i32_0 = arith.constant 0 : i32
    %c0_i32_1 = arith.constant 0 : i32
    return %arg0, %c0_i32, %c0_i32_0 : i32, i32, i32
  }
  func.func @transform_1(%arg0: i32) -> (i32, i32, i32) {
    %c0_i32 = arith.constant 0 : i32
    %c0_i32_0 = arith.constant 0 : i32
    %c0_i32_1 = arith.constant 0 : i32
    return %arg0, %c0_i32, %c0_i32_0 : i32, i32, i32
  }
  func.func @transform_2(%arg0: i32) -> (i32, i32) {
    %c0_i32 = arith.constant 0 : i32
    %c0_i32_0 = arith.constant 0 : i32
    %c0_i32_1 = arith.constant 0 : i32
    return %c0_i32, %c0_i32_0 : i32, i32
  }
  func.func @transform_3(%arg0: i32) -> (i32, i32) {
    %c0_i32 = arith.constant 0 : i32
    %c0_i32_0 = arith.constant 0 : i32
    %c0_i32_1 = arith.constant 0 : i32
    return %c0_i32, %c0_i32_0 : i32, i32
  }
  func.func @transform_4(%arg0: i32) -> (i32, i32) {
    %c0_i32 = arith.constant 0 : i32
    %c0_i32_0 = arith.constant 0 : i32
    %c0_i32_1 = arith.constant 0 : i32
    return %c0_i32, %c0_i32_0 : i32, i32
  }
  func.func @transform_5(%arg0: i32) -> (i32, i32) {
    %c0_i32 = arith.constant 0 : i32
    %c0_i32_0 = arith.constant 0 : i32
    %c0_i32_1 = arith.constant 0 : i32
    return %c0_i32, %c0_i32_0 : i32, i32
  }
  func.func @transform_6(%arg0: i32) -> (i32, i32, i32) {
    %c0_i32 = arith.constant 0 : i32
    %c0_i32_0 = arith.constant 0 : i32
    %c0_i32_1 = arith.constant 0 : i32
    return %arg0, %c0_i32, %c0_i32_0 : i32, i32, i32
  }
}

</mosaic_0001>

<bundles_post_ra>
// kernel: masked_mhsa.1
= control target key start
LH: loop header
LB: loop body
LE: loop exit
PB: predicated region body
PF: predicated region fallthrough
CT: control target
= control target key end

     0   :  { %11 = vsyncpa [#allocation4], 0  ;;  %s2971_s0 = inlined_call_operand.hbm [shape: f32[4,8,32], index: 0, kind: input, shape index: {}]   ;;  %s2972_s1 = inlined_call_operand.vmem [shape: f32[4,1,8], index: 1, kind: input, shape index: {}]   ;;  %s2973_s2 = inlined_call_operand.hbm [shape: f32[32,96], index: 2, kind: input, shape index: {}]   ;;  %s2974_s3 = inlined_call_operand.vmem [shape: f32[1,96], index: 3, kind: input, shape index: {}]   ;;  %s2975_s4 = inlined_call_operand.hbm [shape: f32[32,32], index: 4, kind: input, shape index: {}]   ;;  %s2976_s5 = inlined_call_operand.vmem [shape: f32[1,32], index: 5, kind: input, shape index: {}]   ;;  %s2977_s6 = inlined_call_operand.hbm [shape: f32[4,8,32], index: 6, kind: output, shape index: {}]  }
   0x1   :  { %13 = vsyncpa [#allocation4 + $0x1], 0 }
   0x2   :  { %14 = vsyncpa [#allocation7], 0 }
   0x3   :  { %15 = vsyncpa [#allocation5], 0 }
   0x4   :  { %17 = vsyncpa [#allocation5 + $0x1], 0  ;;  %s2559_s21 = smov 0   ;;  %s2561_s22 = smov 0  }
   0x5   :  { %s2563_s23 = smov 0   ;;  %s2565_s24 = smov 0  }
   0x6 LB: > { %s2580_s25 = sadd.s32 4294967295, %s2498_s24   ;;  %s2010_s26 = sadd.s32 4294967294, %s2498_s24   ;;  %s2498_s24 = sphi %s2565_s24, %s2997_s24   ;;  %s2494_s23 = sphi %s2563_s23, %s2996_s23   ;;  %s2490_s22 = sphi %s2561_s22, %s2995_s22   ;;  %s2486_s21 = sphi %s2559_s21, %s2994_s21  }
   0x7   : > { %p43_p0 = scmp.ne.s32.totalorder %s2490_s22, %s2486_s21  ;;  %p2978_p1 = scmp.eq.s32.totalorder %s2580_s25, 0 }
   0x8   : > { %p183_p3 = scmp.eq.s32.totalorder %s2010_s26, 1  ;;  %p2011_p5 = scmp.ge.s32.totalorder %s2498_s24, 1 }
   0x9   : > { %p2589_p4 = por %p2978_p1, %p43_p0  ;;  %p190_p7 = scmp.lt.s32.totalorder %s2498_s24, 3 }
   0xa   : > { %p2594_p6 = por %p183_p3, %p43_p0  ;;  %s2500_s30 = smov [#allocation6]  }
   0xb   : > { %s2981_s27 = scalar_select %p2589_p4, 1, 0 }
   0xc   : > { %s2982_s28 = scalar_select %p2594_p6, 1, 0 }
   0xd   : > { %p2599_p8 = pnand %p2011_p5, %p190_p7  ;;  %s202_s7 = sshll.u32 %s2500_s30, 4  ;;  %s2603_s7 = int_to_ptr.vmem [resolvable:$true] %s202_s7 }
   0xe   : > { %s2501_s9 = smov [#allocation8]   ;;  %s2342_s13 = scalar_lea.hbm %s2973_s2, 512 }
   0xf   : > { %p2235_p9 = pneg %p2599_p8  ;;  %s218_s10 = sshll.u32 %s2501_s9, 4  ;;  %s2614_s10 = int_to_ptr.vmem [resolvable:$true] %s218_s10 }
  0x10   : > { %p2343_p12 = scmp.ne.s32.totalorder %s2973_s2, %s2342_s13  ;;  %p2349_p5 = scmp.lt.u32.totalorder %s2342_s13, %s2973_s2 }
  0x11   : > { %p2610_p11 = pnand %p2235_p9, %p2978_p1 }
  0x13   : > { %p2344_p13 = pneg %p2610_p11 }
  0x15   : > { %p2345_p0 = pnand %p2344_p13, %p2343_p12 }
  0x17   : > { %p2346_p3 = pneg %p2345_p0 }
  0x19   : > { %p2351_p7 = pnand %p2349_p5, %p2346_p3 }
  0x1b   : > { %2354 = shalt.err (!%p2351_p7)
}
  0x1c   : > { %s2355_s18 = scalar_lea.vmem %s2603_s7, 512  ;;  %p2363_p2 = scmp.lt.s32.totalorder %s2603_s7, %s2603_s7 }
  0x1d   : > { %p2356_p9 = scmp.ne.s32.totalorder %s2603_s7, %s2355_s18  ;;  %p2364_p12 = scmp.lt.s32.totalorder %s2355_s18, %s2355_s18 }
  0x1f   : > { %p2358_p10 = pnand %p2356_p9, %p2344_p13  ;;  %p2365_p0 = por %p2364_p12, %p2363_p2 }
  0x21   : > { %p2359_p1 = pneg %p2358_p10 }
  0x23   : > { %p2366_p6 = pnand %p2365_p0, %p2359_p1 }
  0x25   : > { %2369 = shalt.err (!%p2366_p6)
}
  0x26   : > { %s2502_s19 = smov 128   ;;  %s2503_s20 = smov 8  }
  0x27   : > { %2238 = dma.hbm_to_vmem [thread:$0]  (!%p2610_p11), %s2973_s2, 512, %s2603_s7, [#allocation7], %s2502_s19, %s2502_s19, %s2503_s20  }
  0x28   : > { %s2370_s12 = scalar_lea.hbm %s2975_s4, 512 }
  0x29   : > { %p2371_p1 = scmp.ne.s32.totalorder %s2975_s4, %s2370_s12  ;;  %p2377_p10 = scmp.lt.u32.totalorder %s2370_s12, %s2975_s4 }
  0x2b   : > { %p2373_p2 = pnand %p2371_p1, %p2344_p13 }
  0x2d   : > { %p2374_p6 = pneg %p2373_p2 }
  0x2f   : > { %p2379_p3 = pnand %p2377_p10, %p2374_p6 }
  0x31   : > { %2382 = shalt.err (!%p2379_p3)
}
  0x32   : > { %s2383_s7 = scalar_lea.vmem %s2614_s10, 512  ;;  %p2391_p12 = scmp.lt.s32.totalorder %s2614_s10, %s2614_s10 }
  0x33   : > { %p2384_p5 = scmp.ne.s32.totalorder %s2614_s10, %s2383_s7  ;;  %p2392_p0 = scmp.lt.s32.totalorder %s2383_s7, %s2383_s7 }
  0x35   : > { %p2386_p7 = pnand %p2384_p5, %p2344_p13  ;;  %p2393_p1 = por %p2392_p0, %p2391_p12 }
  0x37   : > { %p2387_p9 = pneg %p2386_p7 }
  0x39   : > { %p2394_p2 = pnand %p2393_p1, %p2387_p9 }
  0x3b   : > { %2397 = shalt.err (!%p2394_p2)
}
  0x3c   : > { %2241 = dma.hbm_to_vmem [thread:$0]  (!%p2610_p11), %s2975_s4, 512, %s2614_s10, [#allocation7], %s2502_s19, %s2502_s19, %s2503_s20  }
  0x3d   : > { %s2675_s8 = sadd.s32 1, %s2498_s24   ;;  %s30_s26 = sadd.s32 1, %s2494_s23 }
  0x3e   : > { %s27_s30 = ssub.s32 %s2498_s24, %s2675_s8  ;;  %p37_p13 = scmp.ne.s32.totalorder %s2494_s23, %s2490_s22 }
  0x3f   : > { %p28_p6 = scmp.eq.s32.totalorder %s27_s30, 0  ;;  %p38_p10 = scmp.eq.s32.totalorder %s2498_s24, 0 }
  0x40   : > { %p2985_p3 = scmp.eq.s32.totalorder %s2580_s25, 1  ;;  %p2252_p7 = scmp.lt.s32.totalorder %s2498_s24, 2 }
  0x41   : > { %s2691_s11 = scalar_select %p28_p6, %s2494_s23, %s30_s26  }
  0x42   : > { %p2685_p5 = por %p2985_p3, %p37_p13  ;;  %p39_p9 = por %p38_p10, %p37_p13 }
  0x43   : > { %s235_s12 = sand.u32 1, %s2494_s23   ;;  %s2059_s10 = sshll.u32 %s2498_s24, 8 }
  0x44   : > { %s2986_s9 = scalar_select %p2685_p5, 1, 0 }
  0x45   : > { %s2015_s13 = sshll.u32 %s235_s12, 4  ;;  %s2698_s16 = scalar_lea.hbm %s2971_s0, %s2059_s10 }
  0x46   : > { %s239_s7 = scalar_lea.vmem [#allocation3], %s2015_s13  ;;  %p2702_p11 = pnand %p2252_p7, %p39_p9 }
  0x47   : > { %s246_s17 = sshll.u32 %s239_s7, 4  ;;  %s2706_s26 = scalar_lea.sflag [#allocation4], %s235_s12  ;;  %s2700_s17 = int_to_ptr.vmem [resolvable:$true] %s246_s17 }
  0x48   : > { %s2398_s30 = scalar_lea.hbm %s2698_s16, 256  ;;  %p2400_p0 = pneg %p2702_p11 }
  0x49   : > { %p2399_p12 = scmp.ne.s32.totalorder %s2698_s16, %s2398_s30  ;;  %s2403_s14 = scalar_lea.hbm %s2971_s0, 512 }
  0x4a   : > { %p2404_p13 = scmp.lt.u32.totalorder %s2698_s16, %s2971_s0  ;;  %p2405_p6 = scmp.lt.u32.totalorder %s2403_s14, %s2398_s30 }
  0x4b   : > { %p2401_p1 = pnand %p2400_p0, %p2399_p12  ;;  %p2407_p3 = scmp.lt.u32.totalorder %s2398_s30, %s2698_s16 }
  0x4c   : > { %p2406_p10 = por %p2405_p6, %p2404_p13 }
  0x4d   : > { %p2402_p2 = pneg %p2401_p1 }
  0x4e   : > { %p2408_p7 = por %p2407_p3, %p2406_p10 }
  0x50   : > { %p2409_p9 = pnand %p2408_p7, %p2402_p2 }
  0x52   : > { %2412 = shalt.err (!%p2409_p9)
}
  0x53   : > { %s2413_s12 = scalar_lea.vmem %s2700_s17, 256  ;;  %s2504_s13 = smov [#allocation3]  }
  0x54   : > { %p2414_p12 = scmp.ne.s32.totalorder %s2700_s17, %s2413_s12  ;;  %s2418_s10 = sshll.u32 %s2504_s13, 4  ;;  %s2419_s10 = int_to_ptr.vmem [resolvable:$false] %s2418_s10 }
  0x55   : > { %s2420_s15 = scalar_lea.vmem %s2419_s10, 512  ;;  %p2421_p4 = scmp.lt.s32.totalorder %s2700_s17, %s2419_s10 }
  0x56   : > { %p2416_p1 = pnand %p2414_p12, %p2400_p0  ;;  %p2422_p13 = scmp.lt.s32.totalorder %s2420_s15, %s2413_s12 }
  0x58   : > { %p2417_p5 = pneg %p2416_p1  ;;  %p2423_p6 = por %p2422_p13, %p2421_p4 }
  0x5a   : > { %p2424_p10 = pnand %p2423_p6, %p2417_p5 }
  0x5c   : > { %2427 = shalt.err (!%p2424_p10)
}
  0x5d   : > { %2245 = dma.hbm_to_vmem [thread:$0]  (!%p2702_p11), %s2698_s16, 256, %s2700_s17, %s2706_s26, %s2502_s19, %s2502_s19, %s2503_s20  }
  0x5e   : > { %266 = sbr.rel (%p2599_p8) target bundleno = 3186 (0xc72), region = 44  ;;  %s2740_s30 = sand.u32 (!%p2599_p8), 1, %s2490_s22  }
  0x5f   : > { %s2019_s14 = sshll.u32 (!%p2599_p8), %s2740_s30, 4  ;;  %s269_s7 = scalar_lea.sflag (!%p2599_p8), [#allocation4], %s2740_s30 }
  0x60   : > { %s272_s18 = scalar_lea.vmem (!%p2599_p8), [#allocation3], %s2019_s14  ;;  %p2988_p4 = scmp.ne.s32.totalorder (!%p2599_p8), %s2981_s27, 0 }
  0x65   : > { %2473 = dma.done.wait (%p2988_p4), %s269_s7, 256  }
  0x66   : > { %2475 = vsyncadd (%p2988_p4), %s269_s7, 4294967040  ;;  %p2989_p5 = scmp.eq.s32.totalorder %s2580_s25, 0 }
  0x68   : > { %2477 = dma.done.wait (%p2989_p5), [#allocation7], 1024   ;;  %p2990_p8 = pmov %p2989_p5 }
  0x69   : > { %vm333_vm0 = vcmask 261120   ;;  %v322_v0 = vld [vmem:[#allocation6] sm:$0xff]  ;;  %v323_v1 = vld [vmem:[#allocation6 + $0x8] sm:$0xff]  ;;  %v324_v2 = vld [vmem:[#allocation6 + $0x10] sm:$0xff]  ;;  %v2505_v8 = vmov 0.0   ;;  %vm2506_vm1 = vmmov 0   ;;  %v423_v18 = vlaneseq }
  0x6a   : > { %2479 = vsyncadd (%p2990_p8), [#allocation7], 4294966272  ;;  %v2207_v3 = vpack.c.bf16 %v323_v1, %v322_v0  ;;  %v325_v4 = vld [vmem:[#allocation6 + $0x18] sm:$0xff]  ;;  %v320_v5 = vld [vmem:[%s272_s18] sm:$0xff]  ;;  %2116 = vmatprep.subr.mxu1 %v2505_v8  ;;  %2118 = vmatprep.mubr.msk.f32.mxu1 %vm2506_vm1, %v2505_v8  ;;  %s2507_s19 = smov 96   ;;  %vm446_vm2 = vcmask 64512  }
  0x6b   : > { %v2211_v6 = vpack.c.bf16 %v325_v4, %v324_v2  ;;  %2113 = vmatprep.mubr.msk.f32.mxu0 %vm333_vm0, %v320_v5  ;;  %v321_v7 = vld [vmem:[%s272_s18 + $0x8] sm:$0xff]  ;;  %v2024_v9 = vld [vmem:[%s2974_s3] ss:$0 sm:$0xff]  ;;  %s2023_s20 = sshll.u32 %s2580_s25, 1  ;;  %v424_v21 = vshrl.u32 %v423_v18, 7  ;;  %v426_v23 = vand.u32 127, %v423_v18 }
  0x6c   : > { %2208 = vmatprep.subr.bf16.mxu0 %v2207_v3  ;;  %p315_p11 = scmp.lt.s32.totalorder %s2023_s20, 3  ;;  %v2508_v29 = vmov -inf   ;;  %s2509_s12 = smov 64   ;;  %vm1114_vm4 = vcmask 130112   ;;  %vm1455_vm5 = vcmask 195712   ;;  %vm1796_vm6 = vcmask 261312  }
  0x6d   : > { %2210 = vmatpush3.bf16.msra.mxu0 %v2207_v3  ;;  %v433_v25 = vsub.s32 0, %v424_v21  ;;  %vm427_vm3 = vcmp.le.s32.totalorder %v426_v23, %v424_v21  ;;  %s2510_s13 = smov 88   ;;  %s2511_s10 = smov 120  }
  0x6e   : > { %2212 = vmatprep.subr.bf16.mxu0 %v2211_v6  ;;  %s2999_s20 = smov (!%p315_p11, %s2023_s20), 3  ;;  %v428_v30 = vsel %vm427_vm3, 0.0, %v2508_v29  ;;  %s2512_s15 = smov 56  }
  0x6f   : > { %s317_s26 = scalar_lea.vmem %s2972_s1, %s2999_s20  ;;  %s2513_s7 = smov 112  }
  0x70   : > { %v417_v19 = vld [vmem:[%s317_s26] sm:$0x1]  ;;  %v418_v22 = vld [vmem:[%s317_s26 + $0x1] sm:$0x1]  ;;  %s2514_s18 = smov 80   ;;  %s2515_s27 = smov 48  }
  0x71   : > { %2214 = vmatpush3.bf16.msra.mxu0 %v2211_v6  ;;  %v419_v20 = vsub.f32 1.0, %v417_v19  ;;  %v420_v26 = vsub.f32 1.0, %v418_v22  ;;  %s2516_s29 = smov 72   ;;  %s2518_s20 = smov 40  }
  0x72   : > { %2136 = vmatprep.subr.mxu0 %v2505_v8  ;;  %s2519_s16 = smov 8   ;;  %s2520_s17 = smov 16  }
  0x73   : > { %v421_v24 = vmul.f32 -3.4028235e+38, %v419_v20  ;;  %v422_v28 = vmul.f32 -3.4028235e+38, %v420_v26  ;;  %s2521_s26 = smov 24   ;;  %p2991_p2 = scmp.ne.s32.totalorder %s2986_s9, 0 }
  0x74   : > { %2114 = vmatmul.mubr.msk.f32.vlgmr.msra.gmra.mrb[0].mxu0 %vm333_vm0, %v321_v7 }
  0x75   : > { %2138 = vmatprep.mubr.msk.f32.mxu0 %vm2506_vm1, %v2505_v8  ;;  %v434_v27 = vrot.slane %v421_v24, %v433_v25  ;;  %v438_v32 = vrot.slane %v422_v28, %v433_v25 }
  0x77   : > { %v2793_v31 = vadd.f32 %v434_v27, %v428_v30  ;;  %v2796_v36 = vadd.f32 %v438_v32, %v428_v30 }
 0x147   : > { %v2115_v10 = vpop.f32.mrb[0].mxu0 }
 0x148   : > { %v406_v11 = vpop.f32.mrb[1].mxu0  ;;  %v2768_v13 = vadd.f32 %v2115_v10, %v2024_v9 }
 0x149   : > { %v2765_v12 = vadd.f32 %v2024_v9, %v406_v11 }
 0x14a   : > { %v2782_v17 = vmul.f32 0.35355338, %v2768_v13 }
 0x14b   : > { %444 = vrot.lane.b32.xlu0 %v2765_v12, %s2507_s19  ;;  %v2774_v15 = vmul.f32 0.35355338, %v2765_v12 }
 0x14f   : > { %523 = vrot.lane.b32.xlu0 %v2768_v13, %s2507_s19  ;;  %s2517_s19 = smov 104  }
 0x1bd   : > { %v445_v14 = vpop.permute.xlu0 %444 }
 0x1be   : > { %2117 = vmatpush3.xpose.msk.msra.mxu1 %vm446_vm2, %v445_v14 }
 0x1bf   : > { %2121 = vmatprep.subr.mxu1 %v2505_v8 }
 0x1c1   : > { %v524_v16 = vpop.permute.xlu0 %523  ;;  %2119 = vmatmul.mubr.msk.f32.vlgmr.msra.gmra.mrb[0].mxu1 %vm446_vm2, %v2774_v15 }
 0x1c2   : > { %2122 = vmatpush3.xpose.msk.msra.mxu1 %vm446_vm2, %v524_v16  ;;  %2123 = vmatprep.mubr.msk.f32.mxu1 %vm2506_vm1, %v2505_v8 }
 0x1c3   : > { %2126 = vmatprep.subr.mxu1 %v2505_v8 }
 0x1c5   : > { %2124 = vmatmul.mubr.msk.f32.vlgmr.msra.gmra.mrb[2].mxu1 %vm446_vm2, %v2782_v17 }
 0x1c6   : > { %2128 = vmatprep.mubr.msk.f32.mxu1 %vm2506_vm1, %v2505_v8 }
 0x294   : > { %v518_v33 = vpop.f32.mrb[0].mxu1 }
 0x295   : > { %v519_v34 = vadd.f32 %v518_v33, %v2793_v31  ;;  %v2120_v35 = vpop.f32.mrb[1].mxu1 }
 0x297   : > { %v600_v37 = vsel %vm446_vm2, %v519_v34, -inf }
 0x298   : > { %601 = vmax.xlane.f32.xlu1 %v600_v37  ;;  %v596_v38 = vpop.f32.mrb[2].mxu1 }
 0x299   : > { %v597_v39 = vadd.f32 %v596_v38, %v2796_v36  ;;  %v2125_v40 = vpop.f32.mrb[3].mxu1 }
 0x29b   : > { %v603_v41 = vsel %vm446_vm2, %v597_v39, -inf }
 0x29c   : > { %604 = vmax.xlane.f32.xlu1 %v603_v41 }
 0x2ad   : > { %622 = vrot.lane.b32.xlu1 %v2765_v12, %s2509_s12 }
 0x2b1   : > { %698 = vrot.lane.b32.xlu1 %v2768_v13, %s2509_s12 }
 0x2b5   : > { %778 = vrot.lane.b32.xlu1 %v2765_v12, %s2510_s13 }
 0x2b9   : > { %856 = vrot.lane.b32.xlu1 %v2768_v13, %s2510_s13 }
 0x325   : > { %v602_v42 = vpop.xlane.xlu1 %601 }
 0x326   : > { %v606_v43 = vsub.f32 %v519_v34, %v602_v42 }
 0x328   : > { %v608_v44 = vmul.f32 1.442695, %v606_v43 }
 0x329   : > { %v605_v45 = vpop.xlane.xlu1 %604 }
 0x32a   : > { %2310 = vpow2.f32 %v608_v44  ;;  %v607_v46 = vsub.f32 %v597_v39, %v605_v45 }
 0x32c   : > { %v610_v47 = vmul.f32 1.442695, %v607_v46 }
 0x32d   : > { %v623_v48 = vpop.permute.xlu1 %622 }
 0x32e   : > { %2312 = vpow2.f32 %v610_v47  ;;  %2127 = vmatpush3.msra.mxu1 %v623_v48 }
 0x32f   : > { %2131 = vmatprep.subr.mxu1 %v2505_v8 }
 0x331   : > { %v699_v49 = vpop.permute.xlu1 %698 }
 0x334   : > { %v2311_v50 = vpop.eup %2310 }
 0x335   : > { %v779_v51 = vpop.permute.xlu1 %778  ;;  %v612_v52 = vsel %vm446_vm2, %v2311_v50, 0.0 }
 0x336   : > { %613 = vadd.xlane.f32.xlu0 %v612_v52  ;;  %2137 = vmatpush3.xpose.msk.msra.mxu0 %vm446_vm2, %v779_v51 }
 0x337   : > { %2146 = vmatprep.subr.mxu0 %v2505_v8 }
 0x338   : > { %v2313_v53 = vpop.eup %2312 }
 0x339   : > { %v615_v54 = vsel %vm446_vm2, %v2313_v53, 0.0  ;;  %v857_v55 = vpop.permute.xlu1 %856 }
 0x33a   : > { %616 = vadd.xlane.f32.xlu1 %v615_v54 }
 0x34b   : > { %854 = vrot.lane.b32.xlu1 %v2782_v17, %s2511_s10 }
 0x34c   : > { %776 = vrot.lane.b32.xlu0 %v2774_v15, %s2511_s10  ;;  %s312_s10 = scalar_lea.vmem [#allocation9], %s2019_s14  ;;  %s1896_s14 = scalar_lea.sflag [#allocation5], %s2740_s30 }
 0x3c3   : > { %v614_v56 = vpop.xlane.xlu0 %613 }
 0x3c4   : > { %2314 = vrcp.f32 %v614_v56 }
 0x3c7   : > { %v777_v57 = vpop.permute.xlu0 %776  ;;  %v617_v58 = vpop.xlane.xlu1 %616 }
 0x3c8   : > { %2316 = vrcp.f32 %v617_v58  ;;  %2139 = vmatmul.mubr.msk.f32.vlgmr.msra.gmra.mrb[2].mxu0 %vm446_vm2, %v777_v57 }
 0x3c9   : > { %2148 = vmatprep.mubr.msk.f32.mxu0 %vm2506_vm1, %v2505_v8 }
 0x3cb   : > { %v855_v63 = vpop.permute.xlu1 %854 }
 0x3ce   : > { %v2315_v59 = vpop.eup %2314 }
 0x3cf   : > { %v620_v60 = vmul.f32 %v2315_v59, %v2311_v50 }
 0x3d1   : > { %2129 = vmatmul.mubr.msk.f32.vlgmr.msra.gmra.mrb[4].mxu1 %vm446_vm2, %v620_v60 }
 0x3d2   : > { %v2317_v61 = vpop.eup %2316  ;;  %2132 = vmatpush3.msra.mxu1 %v699_v49  ;;  %2133 = vmatprep.mubr.msk.f32.mxu1 %vm2506_vm1, %v2505_v8 }
 0x3d3   : > { %v621_v62 = vmul.f32 %v2317_v61, %v2313_v53  ;;  %2141 = vmatprep.subr.mxu1 %v2505_v8 }
 0x3d5   : > { %2134 = vmatmul.mubr.msk.f32.vlgmr.msra.gmra.mrb[6].mxu1 %vm446_vm2, %v621_v62 }
 0x3d6   : > { %2143 = vmatprep.mubr.msk.f32.mxu1 %vm2506_vm1, %v2505_v8 }
 0x3d9   : > { %2142 = vmatpush3.xpose.msk.msra.mxu1 %vm446_vm2, %v857_v55 }
 0x3da   : > { %2151 = vmatprep.subr.mxu1 %v2505_v8 }
 0x3dc   : > { %2144 = vmatmul.mubr.msk.f32.vlgmr.msra.gmra.mrb[8].mxu1 %vm446_vm2, %v855_v63 }
 0x3dd   : > { %2153 = vmatprep.mubr.msk.f32.mxu1 %vm2506_vm1, %v2505_v8 }
 0x49b   : > { %v850_v0 = vpop.f32.mrb[2].mxu0 }
 0x49c   : > { %v851_v1 = vadd.f32 %v850_v0, %v2793_v31  ;;  %v2140_v2 = vpop.f32.mrb[3].mxu0 }
 0x49e   : > { %v932_v3 = vsel %vm446_vm2, %v851_v1, -inf }
 0x49f   : > { %933 = vmax.xlane.f32.xlu1 %v932_v3 }
 0x4a4   : > { %v694_v4 = vpop.f32.mrb[4].mxu1 }
 0x4a5   : > { %774 = vst.msk [vmem:[#allocation2] sm:$0xff] %vm446_vm2, %v694_v4  ;;  %v2130_v5 = vpop.f32.mrb[5].mxu1 }
 0x4a8   : > { %v770_v6 = vpop.f32.mrb[6].mxu1 }
 0x4a9   : > { %775 = vst.msk [vmem:[#allocation2 + $0x8] sm:$0xff] %vm446_vm2, %v770_v6  ;;  %v2135_v7 = vpop.f32.mrb[7].mxu1 }
 0x4af   : > { %v928_v9 = vpop.f32.mrb[8].mxu1 }
 0x4b0   : > { %v929_v10 = vadd.f32 %v928_v9, %v2796_v36  ;;  %v2145_v11 = vpop.f32.mrb[9].mxu1 }
 0x4b2   : > { %v935_v14 = vsel %vm446_vm2, %v929_v10, -inf }
 0x4b3   : > { %936 = vmax.xlane.f32.xlu0 %v935_v14 }
 0x4c9   : > { %1030 = vrot.lane.b32.xlu0 %v2768_v13, %s2512_s15 }
 0x4cd   : > { %1117 = vrot.lane.b32.xlu0 %v2774_v15, %s2513_s7 }
 0x52c   : > { %v934_v16 = vpop.xlane.xlu1 %933 }
 0x52d   : > { %v938_v18 = vsub.f32 %v851_v1, %v934_v16 }
 0x52f   : > { %v940_v19 = vmul.f32 1.442695, %v938_v18 }
 0x531   : > { %2318 = vpow2.f32 %v940_v19 }
 0x53b   : > { %v2319_v20 = vpop.eup %2318 }
 0x53c   : > { %v944_v21 = vsel %vm446_vm2, %v2319_v20, 0.0 }
 0x53d   : > { %945 = vadd.xlane.f32.xlu1 %v944_v21 }
 0x540   : > { %v937_v22 = vpop.xlane.xlu0 %936 }
 0x541   : > { %v939_v24 = vsub.f32 %v929_v10, %v937_v22 }
 0x543   : > { %v942_v25 = vmul.f32 1.442695, %v939_v24 }
 0x544   : > { %v1031_v23 = vpop.permute.xlu0 %1030 }
 0x545   : > { %2152 = vmatpush3.msra.mxu1 %v1031_v23  ;;  %2320 = vpow2.f32 %v942_v25 }
 0x546   : > { %2161 = vmatprep.subr.mxu1 %v2505_v8 }
 0x548   : > { %v1118_v34 = vpop.permute.xlu0 %1117 }
 0x54e   : > { %954 = vrot.lane.b32.xlu1 %v2765_v12, %s2512_s15  ;;  %s1909_s15 = sshll.u32 %s312_s10, 4  ;;  %s2919_s15 = int_to_ptr.vmem [resolvable:$true] %s1909_s15 }
 0x54f   : > { %v2321_v26 = vpop.eup %2320 }
 0x550   : > { %v947_v27 = vsel %vm446_vm2, %v2321_v26, 0.0 }
 0x552   : > { %1119 = vrot.lane.b32.xlu1 %v2765_v12, %s2514_s18 }
 0x556   : > { %1197 = vrot.lane.b32.xlu1 %v2768_v13, %s2514_s18 }
 0x57a   : > { %948 = vadd.xlane.f32.xlu1 %v947_v27 }
 0x58b   : > { %1195 = vrot.lane.b32.xlu1 %v2782_v17, %s2513_s7  ;;  %s2060_s7 = sshll.u32 %s2580_s25, 8  ;;  %s2428_s25 = scalar_lea.vmem %s2919_s15, 256 }
 0x58c   : > { %p2429_p0 = scmp.ne.s32.totalorder %s2919_s15, %s2428_s25 }
 0x58e   : > { %p2430_p3 = pnand %p2429_p0, %p2991_p2 }
 0x590   : > { %p2431_p7 = pneg %p2430_p3 }
 0x5ca   : > { %v946_v28 = vpop.xlane.xlu1 %945 }
 0x5cb   : > { %2322 = vrcp.f32 %v946_v28 }
 0x5ce   : > { %v955_v29 = vpop.permute.xlu1 %954 }
 0x5cf   : > { %2147 = vmatpush3.msra.mxu0 %v955_v29 }
 0x5d0   : > { %2156 = vmatprep.subr.mxu0 %v2505_v8 }
 0x5d2   : > { %v1120_v33 = vpop.permute.xlu1 %1119 }
 0x5d5   : > { %v2323_v30 = vpop.eup %2322 }
 0x5d6   : > { %v952_v32 = vmul.f32 %v2323_v30, %v2319_v20  ;;  %v1198_v35 = vpop.permute.xlu1 %1197 }
 0x5d8   : > { %2149 = vmatmul.mubr.msk.f32.vlgmr.msra.gmra.mrb[4].mxu0 %vm446_vm2, %v952_v32 }
 0x5d9   : > { %2157 = vmatpush3.xpose.msk.msra.mxu0 %vm446_vm2, %v1120_v33  ;;  %2158 = vmatprep.mubr.msk.f32.mxu0 %vm2506_vm1, %v2505_v8 }
 0x5da   : > { %2166 = vmatprep.subr.mxu0 %v2505_v8 }
 0x5dc   : > { %2159 = vmatmul.mubr.msk.f32.vlgmr.msra.gmra.mrb[6].mxu0 %vm446_vm2, %v1118_v34 }
 0x5dd   : > { %2168 = vmatprep.mubr.msk.f32.mxu0 %vm2506_vm1, %v2505_v8 }
 0x607   : > { %v949_v37 = vpop.xlane.xlu1 %948 }
 0x608   : > { %2324 = vrcp.f32 %v949_v37 }
 0x60b   : > { %v1196_v40 = vpop.permute.xlu1 %1195 }
 0x612   : > { %v2325_v38 = vpop.eup %2324 }
 0x613   : > { %v953_v39 = vmul.f32 %v2325_v38, %v2321_v26 }
 0x615   : > { %2154 = vmatmul.mubr.msk.f32.vlgmr.msra.gmra.mrb[10].mxu1 %vm446_vm2, %v953_v39 }
 0x616   : > { %2162 = vmatpush3.xpose.msk.msra.mxu1 %vm446_vm2, %v1198_v35  ;;  %2163 = vmatprep.mubr.msk.f32.mxu1 %vm2506_vm1, %v2505_v8 }
 0x617   : > { %2171 = vmatprep.subr.mxu1 %v2505_v8 }
 0x619   : > { %2164 = vmatmul.mubr.msk.f32.vlgmr.msra.gmra.mrb[12].mxu1 %vm446_vm2, %v1196_v40 }
 0x61a   : > { %2173 = vmatprep.mubr.msk.f32.mxu1 %vm2506_vm1, %v2505_v8 }
 0x6ab   : > { %v2859_v41 = vpop.f32.mrb[4].mxu0 }
 0x6ac   : > { %v2150_v42 = vpop.f32.mrb[5].mxu0 }
 0x6af   : > { %v1191_v43 = vpop.f32.mrb[6].mxu0 }
 0x6b0   : > { %v1192_v44 = vadd.f32 %v1191_v43, %v2793_v31  ;;  %v2160_v45 = vpop.f32.mrb[7].mxu0 }
 0x6b2   : > { %v1273_v46 = vsel %vm446_vm2, %v1192_v44, -inf }
 0x6b3   : > { %1274 = vmax.xlane.f32.xlu0 %v1273_v46  ;;  %v1801_v46 = vld [vmem:[#allocation8] sm:$0xff] }
 0x6e8   : > { %v2863_v47 = vpop.f32.mrb[10].mxu1 }
 0x6e9   : > { %v2155_v48 = vpop.f32.mrb[11].mxu1 }
 0x6ec   : > { %v1269_v49 = vpop.f32.mrb[12].mxu1 }
 0x6ed   : > { %v1270_v50 = vadd.f32 %v1269_v49, %v2796_v36  ;;  %v2165_v51 = vpop.f32.mrb[13].mxu1 }
 0x6ee   : > { %v1804_v51 = vld [vmem:[#allocation8 + $0x18] sm:$0xff] }
 0x6ef   : > { %v1276_v52 = vsel %vm446_vm2, %v1270_v50, -inf }
 0x6f0   : > { %1277 = vmax.xlane.f32.xlu1 %v1276_v52 }
 0x701   : > { %1295 = vrot.lane.b32.xlu1 %v2765_v12, %s2515_s27 }
 0x705   : > { %1460 = vrot.lane.b32.xlu1 %v2765_v12, %s2516_s29 }
 0x709   : > { %1538 = vrot.lane.b32.xlu1 %v2768_v13, %s2516_s29  ;;  %s2924_s29 = scalar_lea.hbm %s2977_s6, %s2060_s7 }
 0x70d   : > { %1536 = vrot.lane.b32.xlu1 %v2782_v17, %s2517_s19 }
 0x740   : > { %v1275_v53 = vpop.xlane.xlu0 %1274 }
 0x741   : > { %v1279_v54 = vsub.f32 %v1192_v44, %v1275_v53 }
 0x743   : > { %v1281_v55 = vmul.f32 1.442695, %v1279_v54 }
 0x745   : > { %2326 = vpow2.f32 %v1281_v55 }
 0x74f   : > { %v2327_v56 = vpop.eup %2326 }
 0x750   : > { %v1285_v57 = vsel %vm446_vm2, %v2327_v56, 0.0 }
 0x751   : > { %1286 = vadd.xlane.f32.xlu0 %v1285_v57 }
 0x767   : > { %1371 = vrot.lane.b32.xlu0 %v2768_v13, %s2515_s27 }
 0x77d   : > { %v1278_v58 = vpop.xlane.xlu1 %1277 }
 0x77e   : > { %v1280_v59 = vsub.f32 %v1270_v50, %v1278_v58  ;;  %v1803_v50 = vld [vmem:[#allocation8 + $0x10] sm:$0xff] }
 0x77f   : > { %v2219_v52 = vpack.c.bf16 %v1804_v51, %v1803_v50 }
 0x780   : > { %v1283_v60 = vmul.f32 1.442695, %v1280_v59  ;;  %v2051_v59 = vld [vmem:[%s2976_s5] ss:$0 sm:$0xff] }
 0x781   : > { %v1296_v61 = vpop.permute.xlu1 %1295 }
 0x782   : > { %2328 = vpow2.f32 %v1283_v60  ;;  %2167 = vmatpush3.msra.mxu0 %v1296_v61 }
 0x783   : > { %2176 = vmatprep.subr.mxu0 %v2505_v8 }
 0x785   : > { %v1461_v3 = vpop.permute.xlu1 %1460 }
 0x789   : > { %v1539_v6 = vpop.permute.xlu1 %1538 }
 0x78c   : > { %v2329_v62 = vpop.eup %2328 }
 0x78d   : > { %v1288_v17 = vsel %vm446_vm2, %v2329_v62, 0.0  ;;  %v1537_v9 = vpop.permute.xlu1 %1536 }
 0x78e   : > { %1289 = vadd.xlane.f32.xlu0 %v1288_v17 }
 0x7a4   : > { %1458 = vrot.lane.b32.xlu0 %v2774_v15, %s2517_s19  ;;  %s2522_s19 = smov [#allocation9]  }
 0x7de   : > { %v1287_v63 = vpop.xlane.xlu0 %1286 }
 0x7df   : > { %2330 = vrcp.f32 %v1287_v63 }
 0x7e2   : > { %v1372_v0 = vpop.permute.xlu0 %1371 }
 0x7e3   : > { %2172 = vmatpush3.msra.mxu1 %v1372_v0 }
 0x7e4   : > { %2181 = vmatprep.subr.mxu1 %v2505_v8 }
 0x7e9   : > { %v2331_v1 = vpop.eup %2330 }
 0x7ea   : > { %v1293_v2 = vmul.f32 %v2331_v1, %v2327_v56 }
 0x7ec   : > { %2169 = vmatmul.mubr.msk.f32.vlgmr.msra.gmra.mrb[8].mxu0 %vm446_vm2, %v1293_v2 }
 0x7ed   : > { %2177 = vmatpush3.xpose.msk.msra.mxu0 %vm446_vm2, %v1461_v3  ;;  %2178 = vmatprep.mubr.msk.f32.mxu0 %vm2506_vm1, %v2505_v8 }
 0x7ee   : > { %2186 = vmatprep.subr.mxu0 %v2505_v8 }
 0x81b   : > { %v1290_v4 = vpop.xlane.xlu0 %1289 }
 0x81c   : > { %2332 = vrcp.f32 %v1290_v4 }
 0x81f   : > { %v1459_v15 = vpop.permute.xlu0 %1458 }
 0x820   : > { %2179 = vmatmul.mubr.msk.f32.vlgmr.msra.gmra.mrb[10].mxu0 %vm446_vm2, %v1459_v15 }
 0x821   : > { %2188 = vmatprep.mubr.msk.f32.mxu0 %vm2506_vm1, %v2505_v8 }
 0x826   : > { %v2333_v5 = vpop.eup %2332 }
 0x827   : > { %v1294_v7 = vmul.f32 %v2333_v5, %v2329_v62 }
 0x829   : > { %2174 = vmatmul.mubr.msk.f32.vlgmr.msra.gmra.mrb[14].mxu1 %vm446_vm2, %v1294_v7 }
 0x82a   : > { %2182 = vmatpush3.xpose.msk.msra.mxu1 %vm446_vm2, %v1539_v6  ;;  %2183 = vmatprep.mubr.msk.f32.mxu1 %vm2506_vm1, %v2505_v8 }
 0x82b   : > { %2191 = vmatprep.subr.mxu1 %v2505_v8 }
 0x82d   : > { %2184 = vmatmul.mubr.msk.f32.vlgmr.msra.gmra.mrb[16].mxu1 %vm446_vm2, %v1537_v9 }
 0x82e   : > { %2193 = vmatprep.mubr.msk.f32.mxu1 %vm2506_vm1, %v2505_v8 }
 0x8bf   : > { %v1367_v10 = vpop.f32.mrb[8].mxu0 }
 0x8c0   : > { %v2170_v11 = vpop.f32.mrb[9].mxu0 }
 0x8f3   : > { %v1532_v14 = vpop.f32.mrb[10].mxu0 }
 0x8f4   : > { %v1533_v16 = vadd.f32 %v1532_v14, %v2793_v31  ;;  %v2180_v18 = vpop.f32.mrb[11].mxu0 }
 0x8f6   : > { %v1614_v19 = vsel %vm446_vm2, %v1533_v16, -inf }
 0x8f7   : > { %1615 = vmax.xlane.f32.xlu0 %v1614_v19 }
 0x8fc   : > { %v1443_v20 = vpop.f32.mrb[14].mxu1 }
 0x8fd   : > { %v2175_v21 = vpop.f32.mrb[15].mxu1 }
 0x900   : > { %v1610_v22 = vpop.f32.mrb[16].mxu1 }
 0x901   : > { %v1611_v23 = vadd.f32 %v1610_v22, %v2796_v36  ;;  %v2185_v24 = vpop.f32.mrb[17].mxu1 }
 0x903   : > { %v1617_v25 = vsel %vm446_vm2, %v1611_v23, -inf }
 0x904   : > { %1618 = vmax.xlane.f32.xlu1 %v1617_v25 }
 0x915   : > { %1636 = vrot.lane.b32.xlu1 %v2765_v12, %s2518_s20 }
 0x919   : > { %1108 = vrot.lane.b32.xlu1 %v2859_v41, %s2519_s16 }
 0x91d   : > { %1110 = vrot.lane.b32.xlu1 %v2863_v47, %s2519_s16 }
 0x921   : > { %1451 = vrot.lane.b32.xlu1 %v1443_v20, %s2520_s17 }
 0x984   : > { %v1616_v8 = vpop.xlane.xlu0 %1615 }
 0x985   : > { %v1620_v31 = vsub.f32 %v1533_v16, %v1616_v8 }
 0x987   : > { %v1622_v36 = vmul.f32 1.442695, %v1620_v31 }
 0x989   : > { %2334 = vpow2.f32 %v1622_v36 }
 0x991   : > { %v1619_v26 = vpop.xlane.xlu1 %1618 }
 0x992   : > { %v1621_v27 = vsub.f32 %v1611_v23, %v1619_v26 }
 0x993   : > { %v2335_v28 = vpop.eup %2334 }
 0x994   : > { %v1624_v29 = vmul.f32 1.442695, %v1621_v27  ;;  %v1626_v30 = vsel %vm446_vm2, %v2335_v28, 0.0 }
 0x995   : > { %1627 = vadd.xlane.f32.xlu0 %v1626_v30  ;;  %v1637_v12 = vpop.permute.xlu1 %1636 }
 0x996   : > { %2336 = vpow2.f32 %v1624_v29  ;;  %2187 = vmatpush3.msra.mxu0 %v1637_v12 }
 0x999   : > { %v1109_v32 = vpop.permute.xlu1 %1108 }
 0x99a   : > { %1115 = vst.msk [vmem:[#allocation2] sm:$0xff] %vm1114_vm4, %v1109_v32 }
 0x99d   : > { %v1111_v33 = vpop.permute.xlu1 %1110 }
 0x99e   : > { %1116 = vst.msk [vmem:[#allocation2 + $0x8] sm:$0xff] %vm1114_vm4, %v1111_v33 }
 0x9a0   : > { %v2337_v34 = vpop.eup %2336 }
 0x9a1   : > { %v1452_v35 = vpop.permute.xlu1 %1451  ;;  %v1629_v37 = vsel %vm446_vm2, %v2337_v34, 0.0 }
 0x9a2   : > { %1457 = vst.msk [vmem:[#allocation2 + $0x8] sm:$0xff] %vm1455_vm5, %v1452_v35  ;;  %1630 = vadd.xlane.f32.xlu0 %v1629_v37 }
 0x9b8   : > { %1712 = vrot.lane.b32.xlu0 %v2768_v13, %s2518_s20  ;;  %v1802_v13 = vld [vmem:[#allocation8 + $0x8] sm:$0xff]  ;;  %s2432_s20 = sshll.u32 %s2522_s19, 4  ;;  %s2433_s20 = int_to_ptr.vmem [resolvable:$false] %s2432_s20 }
 0x9b9   : > { %v2215_v48 = vpack.c.bf16 %v1802_v13, %v1801_v46  ;;  %p2435_p9 = scmp.lt.s32.totalorder %s2919_s15, %s2433_s20 }
 0x9bb   : > { %2216 = vmatprep.subr.bf16.mxu0 %v2215_v48 }
 0x9bc   : > { %1449 = vrot.lane.b32.xlu0 %v1367_v10, %s2520_s17  ;;  %s2434_s17 = scalar_lea.vmem %s2433_s20, 512 }
 0x9bd   : > { %p2436_p12 = scmp.lt.s32.totalorder %s2434_s17, %s2428_s25 }
 0x9bf   : > { %p2437_p1 = por %p2436_p12, %p2435_p9 }
 0x9c1   : > { %p2438_p13 = pnand %p2437_p1, %p2431_p7 }
 0xa22   : > { %v1628_v38 = vpop.xlane.xlu0 %1627 }
 0xa23   : > { %2338 = vrcp.f32 %v1628_v38 }
 0xa2d   : > { %v2339_v39 = vpop.eup %2338 }
 0xa2e   : > { %v1634_v40 = vmul.f32 %v2339_v39, %v2335_v28 }
 0xa2f   : > { %v1631_v41 = vpop.xlane.xlu0 %1630 }
 0xa30   : > { %2340 = vrcp.f32 %v1631_v41  ;;  %2189 = vmatmul.mubr.msk.f32.vlgmr.msra.gmra.mrb[12].mxu0 %vm446_vm2, %v1634_v40 }
 0xa31   : > { %2218 = vmatpush3.bf16.msra.mxu0 %v2215_v48 }
 0xa32   : > { %2220 = vmatprep.subr.bf16.mxu0 %v2219_v52 }
 0xa33   : > { %v1713_v42 = vpop.permute.xlu0 %1712 }
 0xa34   : > { %2192 = vmatpush3.msra.mxu1 %v1713_v42 }
 0xa35   : > { %2222 = vmatpush3.bf16.msra.mxu0 %v2219_v52 }
 0xa37   : > { %v1450_v43 = vpop.permute.xlu0 %1449 }
 0xa38   : > { %1456 = vst.msk [vmem:[#allocation2] sm:$0xff] %vm1455_vm5, %v1450_v43 }
 0xa3a   : > { %v2341_v44 = vpop.eup %2340 }
 0xa3b   : > { %v1635_v45 = vmul.f32 %v2341_v44, %v2337_v34 }
 0xa3d   : > { %2194 = vmatmul.mubr.msk.f32.vlgmr.msra.gmra.mrb[18].mxu1 %vm446_vm2, %v1635_v45 }
 0xb03   : > { %v1708_v47 = vpop.f32.mrb[12].mxu0 }
 0xb04   : > { %1790 = vrot.lane.b32.xlu0 %v1708_v47, %s2521_s26  ;;  %v2190_v49 = vpop.f32.mrb[13].mxu0 }
 0xb10   : > { %v1784_v53 = vpop.f32.mrb[18].mxu1 }
 0xb11   : > { %1792 = vrot.lane.b32.xlu1 %v1784_v53, %s2521_s26  ;;  %v2195_v54 = vpop.f32.mrb[19].mxu1 }
 0xb76   : > { %v1791_v55 = vpop.permute.xlu0 %1790 }
 0xb77   : > { %1797 = vst.msk [vmem:[#allocation2] sm:$0xff] %vm1796_vm6, %v1791_v55 }
 0xb7e   : > { %v1799_v56 = vld [vmem:[#allocation2] sm:$0xff] }
 0xb7f   : > { %2204 = vmatprep.mubr.msk.f32.mxu0 %vm333_vm0, %v1799_v56 }
 0xb83   : > { %v1793_v57 = vpop.permute.xlu1 %1792 }
 0xb84   : > { %1798 = vst.msk [vmem:[#allocation2 + $0x8] sm:$0xff] %vm1796_vm6, %v1793_v57 }
 0xb8b   : > { %v1800_v58 = vld [vmem:[#allocation2 + $0x8] sm:$0xff] }
 0xb8c   : > { %2205 = vmatmul.mubr.msk.f32.vlgmr.msra.gmra.mrb[14].mxu0 %vm333_vm0, %v1800_v58 }
 0xc5f   : > { %v2206_v60 = vpop.f32.mrb[14].mxu0 }
 0xc60   : > { %v1890_v61 = vadd.f32 %v2206_v60, %v2051_v59  ;;  %v1884_v62 = vpop.f32.mrb[15].mxu0 }
 0xc61   : > { %v1885_v17 = vadd.f32 %v2051_v59, %v1884_v62 }
 0xc62   : > { %1894 = vst.msk [vmem:[%s312_s10 + $0x8] sm:$0xff] %vm333_vm0, %v1890_v61 }
 0xc63   : > { %1893 = vst.msk [vmem:[%s312_s10] sm:$0xff] %vm333_vm0, %v1885_v17 }
 0xc64   : > { %2441 = shalt.err (!%p2438_p13)
}
 0xc65   : > { %s2442_s26 = scalar_lea.hbm %s2924_s29, 256  ;;  %s2446_s10 = scalar_lea.hbm %s2977_s6, 512 }
 0xc66   : > { %p2443_p6 = scmp.ne.s32.totalorder %s2924_s29, %s2442_s26  ;;  %p2447_p5 = scmp.lt.u32.totalorder %s2924_s29, %s2977_s6 }
 0xc67   : > { %p2448_p8 = scmp.lt.u32.totalorder %s2446_s10, %s2442_s26  ;;  %p2450_p0 = scmp.lt.u32.totalorder %s2442_s26, %s2924_s29 }
 0xc68   : > { %p2444_p10 = pnand %p2443_p6, %p2991_p2 }
 0xc69   : > { %p2449_p11 = por %p2448_p8, %p2447_p5 }
 0xc6a   : > { %p2445_p4 = pneg %p2444_p10 }
 0xc6b   : > { %p2451_p3 = por %p2450_p0, %p2449_p11 }
 0xc6d   : > { %p2452_p7 = pnand %p2451_p3, %p2445_p4 }
 0xc6f   : > { %2455 = shalt.err (!%p2452_p7)
}
 0xc70   : > { %s2523_s27 = smov 128  }
 0xc71   : > { %2233 = dma.vmem_to_hbm [thread:$0]  (%p2991_p2), %s2919_s15, 256, %s2924_s29, %s1896_s14, %s2523_s27, %s2523_s27, %s2519_s16  }
 0xc72 PF: > { %s1924_s25 = sand.u32 1, %s2486_s21   ;;  %p2992_p9 = scmp.ne.s32.totalorder %s2982_s28, 0 }
 0xc73   : > { %p2993_p12 = scmp.ge.s32.totalorder %s2498_s24, 2  ;;  %s1925_s19 = scalar_lea.sflag [#allocation5], %s1924_s25 }
 0xc75   : > { %p2247_p1 = pnand %p2993_p12, %p2992_p9 }
 0xc77   : > { %2481 = dma.done.wait (!%p2247_p1), %s1925_s19, 256  }
 0xc78   : > { %2483 = vsyncadd (!%p2247_p1), %s1925_s19, 4294967040  ;;  %p20_p13 = scmp.ge.s32.totalorder %s2675_s8, 4   ;;  %s2994_s21 = smov %s2490_s22 }
 0xc79   : > { %s2995_s22 = smov %s2494_s23  ;;  %s2996_s23 = smov %s2691_s11 }
 0xc7a   : > { %s2997_s24 = smov %s2675_s8  ;;  %22 = sbr.rel (!%p20_p13) target bundleno = 6 (0x6), region = 100 }
 0xc81   :  { %1930 = vsyncpa [#allocation4], 1 }
 0xc82   :  { %1932 = vsyncpa [#allocation4 + $0x1], 1 }
 0xc83   :  { %1933 = vsyncpa [#allocation7], 1 }
 0xc84   :  { %1934 = vsyncpa [#allocation5], 1 }
 0xc85   :  { %1936 = vsyncpa [#allocation5 + $0x1], 1 }

</bundles_post_ra>
